<compile_context>
chip_gen: v7x
topology: tpu7x:2x2x1
jax: 0.10.0
libtpu: 0.0.40
codegen_flags: <defaults>
</compile_context>

<pallas_src>
import jax
import jax.numpy as jnp
from jax import lax
from jax.experimental import pallas as pl
from jax.experimental.pallas import tpu as pltpu

KSIZE = 7
PAD = (KSIZE - 1) // 2  # 3


# --------------------------------------------------------------------------- #
# Small helpers
# --------------------------------------------------------------------------- #
def _round_up(v, m):
    return ((v + m - 1) // m) * m


def _vmem_capacity():
    try:
        return int(pltpu.get_tpu_info().vmem_capacity_bytes)
    except Exception:
        return 64 << 20  # v7x per-TensorCore VMEM: safe minimum across generations


def _vmem_limit(vmem_cap, *buf_bytes):
    need = sum(int(b) for b in buf_bytes) + (4 << 20)
    return int(min(vmem_cap - (4 << 20), max(need, 32 << 20)))


def _pick_rows(C, row_bytes, budget):
    """Channel rows per block: full C, or a multiple of 8 with block <= budget.
    Need not divide C (partial blocks + in-kernel masking handle the remainder)."""
    if C <= 8:
        return C
    max_r = max(8, (budget // row_bytes) // 8 * 8)
    if C <= max_r:
        return C
    r = max_r
    while r >= 8:          # prefer a clean divisor of C (no masking / partial blocks)
        if C % r == 0:
            return r
        r -= 8
    return max_r


def _pick_tiles(C, Lp, itemsize, budget):
    """(rows, lanes) for a (1, rows, lanes) block.  Full-Lp (contiguous) rows are
    preferred; L is tiled (multiples of 128 dividing Lp) only if it must be."""
    l_t = Lp
    c_t = _pick_rows(C, l_t * itemsize, budget)
    if c_t * l_t * itemsize > budget and Lp > 128:
        min_rows = C if C < 8 else 8
        l_t = max(128, (budget // (min_rows * itemsize)) // 128 * 128)
        l_t = min(l_t, Lp)
        cand = l_t
        while cand >= 128:     # largest 128-multiple divisor of Lp (128 always works)
            if Lp % cand == 0:
                l_t = cand
                break
            cand -= 128
        c_t = _pick_rows(C, l_t * itemsize, budget)
    return c_t, l_t


def _conv7_sigmoid(pooled, w_ref, b_ref):
    """7-tap 'same' conv over packed pooled rows (1, 2, Lp) f32, then sigmoid.

    `pooled` must already be 0 at every lane >= the true length L (that emulates
    the conv's zero padding); the edge masks below only fix the roll wrap-around
    at lane 0 / lane Lp.  out[j] = sigmoid(b + sum_k w[:,k] . pooled[:, j+k-PAD]).
    """
    Lp = pooled.shape[-1]
    lane = lax.broadcasted_iota(jnp.int32, (1, 1, Lp), 2)
    w_max = [w_ref[0, k] for k in range(KSIZE)]      # hoist SMEM scalar reads
    w_mean = [w_ref[1, k] for k in range(KSIZE)]
    acc = jnp.full((1, 1, Lp), b_ref[0], jnp.float32)
    for k in range(KSIZE):
        s = PAD - k                                  # static shift: tap reads in[j - s]
        r = pooled if s == 0 else pltpu.roll(pooled, shift=s % Lp, axis=2)
        if s > 0:       # left edge: taps before position 0 are zero padding
            r = jnp.where(lane >= s, r, 0.0)
        elif s < 0:     # right edge: taps past Lp-1 would wrap around -> zero them
            r = jnp.where(lane < Lp + s, r, 0.0)
        acc = acc + w_max[k] * r[:, 0:1, :] + w_mean[k] * r[:, 1:2, :]
    return jax.nn.sigmoid(acc)


# --------------------------------------------------------------------------- #
# Fused single-pass path: pool -> conv7 -> sigmoid -> gate, one block per batch
# --------------------------------------------------------------------------- #
def _fused_path(x, w, b, L, Lp, vmem_cap):
    N, C, _ = x.shape
    itemsize = x.dtype.itemsize
    inv_c = 1.0 / C

    def kernel(x_ref, w_ref, b_ref, o_ref):
        xb = x_ref[...].astype(jnp.float32)                  # (1, C, Lp)
        mx = jnp.max(xb, axis=1, keepdims=True)              # (1, 1, Lp)
        mn = jnp.sum(xb, axis=1, keepdims=True) * inv_c      # (1, 1, Lp)
        if Lp != L:  # lanes >= L are garbage reads: force pooled rows to 0 there
            lane = lax.broadcasted_iota(jnp.int32, (1, 1, Lp), 2)
            valid = lane < L
            mx = jnp.where(valid, mx, 0.0)
            mn = jnp.where(valid, mn, 0.0)
        pooled = jnp.concatenate([mx, mn], axis=1)           # (1, 2, Lp)
        scale = _conv7_sigmoid(pooled, w_ref, b_ref)         # (1, 1, Lp) f32
        o_ref[...] = (xb * scale).astype(o_ref.dtype)        # OOB lanes dropped

    slab = C * Lp * itemsize
    need = 4 * slab + 2 * C * Lp * 4 + (4 << 20)
    vmem_limit = int(min(vmem_cap - (4 << 20), need + (16 << 20)))
    return pl.pallas_call(
        kernel,
        out_shape=jax.ShapeDtypeStruct((N, C, L), x.dtype),
        grid=(N,),
        in_specs=[
            pl.BlockSpec((1, C, Lp), lambda n: (n, 0, 0)),
            pl.BlockSpec(memory_space=pltpu.MemorySpace.SMEM),   # w (2, 7)
            pl.BlockSpec(memory_space=pltpu.MemorySpace.SMEM),   # b (1,)
        ],
        out_specs=pl.BlockSpec((1, C, Lp), lambda n: (n, 0, 0)),
        compiler_params=pltpu.CompilerParams(
            dimension_semantics=("parallel",),
            vmem_limit_bytes=vmem_limit),
    )(x, w, b)


# --------------------------------------------------------------------------- #
# Two-pass fallback for very large C*Lp slabs
# --------------------------------------------------------------------------- #
def _two_pass_path(x, w, b, L, Lp, vmem_cap, block_budget):
    N, C, _ = x.shape
    itemsize = x.dtype.itemsize
    inv_c = 1.0 / C

    # ---- Pass A1: channel max / mean -> pooled (N, 2, Lp) f32 --------------
    c_r, l_t = _pick_tiles(C, Lp, itemsize, block_budget)
    nl = pl.cdiv(Lp, l_t)
    nc = pl.cdiv(C, c_r)
    ragged_c = (C % c_r) != 0
    ragged_l = Lp != L

    def pool_kernel(x_ref, pooled_ref, max_acc, sum_acc):
        li = pl.program_id(1)
        ci = pl.program_id(2)

        @pl.when(ci == 0)
        def _():
            max_acc[...] = jnp.full(max_acc.shape, -jnp.inf, max_acc.dtype)
            sum_acc[...] = jnp.zeros(sum_acc.shape, sum_acc.dtype)

        xb = x_ref[...].astype(jnp.float32)                   # (1, c_r, l_t)
        if ragged_c:  # partial channel block: mask garbage rows
            row = ci * c_r + lax.broadcasted_iota(jnp.int32, (1, c_r, l_t), 1)
            rvalid = row < C
            xb_max = jnp.where(rvalid, xb, -jnp.inf)
            xb_sum = jnp.where(rvalid, xb, 0.0)
        else:
            xb_max = xb
            xb_sum = xb
        max_acc[...] = jnp.maximum(max_acc[...],
                                   jnp.max(xb_max, axis=1, keepdims=True))
        sum_acc[...] = sum_acc[...] + jnp.sum(xb_sum, axis=1, keepdims=True)

        @pl.when(ci == nc - 1)
        def _():
            mx = max_acc[...]
            mn = sum_acc[...] * inv_c
            if ragged_l:  # lanes >= L: force to 0 (emulates the conv's zero pad)
                gl = li * l_t + lax.broadcasted_iota(jnp.int32, (1, 1, l_t), 2)
                valid = gl < L
                mx = jnp.where(valid, mx, 0.0)
                mn = jnp.where(valid, mn, 0.0)
            pooled_ref[...] = jnp.concatenate([mx, mn], axis=1)

    x_blk = c_r * l_t * itemsize
    pool_limit = _vmem_limit(vmem_cap,
                             2 * x_blk, c_r * l_t * 4,   # in (x2) + f32 temp
                             2 * 2 * l_t * 4,            # pooled out (x2)
                             4 * l_t * 4)                # scratch accumulators
    pooled = pl.pallas_call(
        pool_kernel,
        out_shape=jax.ShapeDtypeStruct((N, 2, Lp), jnp.float32),
        grid=(N, nl, nc),
        in_specs=[pl.BlockSpec((1, c_r, l_t), lambda n, li, ci: (n, ci, li))],
        out_specs=pl.BlockSpec((1, 2, l_t), lambda n, li, ci: (n, 0, li)),
        scratch_shapes=[pltpu.VMEM((1, 1, l_t), jnp.float32),   # running max
                        pltpu.VMEM((1, 1, l_t), jnp.float32)],  # running sum
        compiler_params=pltpu.CompilerParams(
            dimension_semantics=("parallel", "parallel", "arbitrary"),
            vmem_limit_bytes=pool_limit),
    )(x)

    # ---- Pass A2: conv7 + sigmoid -> scale (N, 1, Lp) f32 (tiny traffic) ----
    def conv_kernel(p_ref, w_ref, b_ref, s_ref):
        s_ref[...] = _conv7_sigmoid(p_ref[...], w_ref, b_ref)

    conv_limit = _vmem_limit(vmem_cap, 4 * Lp * 4, 2 * Lp * 4, 8 * Lp * 4)
    scale = pl.pallas_call(
        conv_kernel,
        out_shape=jax.ShapeDtypeStruct((N, 1, Lp), jnp.float32),
        grid=(N,),
        in_specs=[
            pl.BlockSpec((1, 2, Lp), lambda n: (n, 0, 0)),
            pl.BlockSpec(memory_space=pltpu.MemorySpace.SMEM),
            pl.BlockSpec(memory_space=pltpu.MemorySpace.SMEM),
        ],
        out_specs=pl.BlockSpec((1, 1, Lp), lambda n: (n, 0, 0)),
        compiler_params=pltpu.CompilerParams(
            dimension_semantics=("parallel",),
            vmem_limit_bytes=conv_limit),
    )(pooled, w, b)

    # ---- Pass B: out = x * scale (lane-dense, fully parallel) ---------------
    c_g, l_g = _pick_tiles(C, Lp, itemsize, block_budget)

    def gate_kernel(x_ref, s_ref, o_ref):
        xb = x_ref[...].astype(jnp.float32)                   # (1, c_g, l_g)
        o_ref[...] = (xb * s_ref[...]).astype(o_ref.dtype)    # OOB stores dropped

    g_blk = c_g * l_g * itemsize
    gate_limit = _vmem_limit(vmem_cap, 2 * g_blk, 2 * g_blk,
                             2 * c_g * l_g * 4, 2 * l_g * 4)
    return pl.pallas_call(
        gate_kernel,
        out_shape=jax.ShapeDtypeStruct((N, C, L), x.dtype),
        grid=(N, pl.cdiv(C, c_g), pl.cdiv(Lp, l_g)),
        in_specs=[
            pl.BlockSpec((1, c_g, l_g), lambda n, c, l: (n, c, l)),
            pl.BlockSpec((1, 1, l_g), lambda n, c, l: (n, 0, l)),
        ],
        out_specs=pl.BlockSpec((1, c_g, l_g), lambda n, c, l: (n, c, l)),
        compiler_params=pltpu.CompilerParams(
            dimension_semantics=("parallel", "parallel", "parallel"),
            vmem_limit_bytes=gate_limit),
    )(x, scale)


# --------------------------------------------------------------------------- #
# Public wrapper
# --------------------------------------------------------------------------- #
def spatial_gate(x, w, b, *, force_two_pass=False, block_budget=None):
    """x: (N, C, L); w: (2, KSIZE); b: (1,)  ->  (N, C, L), same dtype as x.

    force_two_pass / block_budget are testing hooks (exercise the tiled fallback
    at small shapes); by default the fused path is chosen whenever it fits VMEM.
    """
    N, C, L = x.shape
    assert w.shape == (2, KSIZE) and b.shape == (1,)
    Lp = _round_up(L, 128)
    itemsize = x.dtype.itemsize
    vmem_cap = _vmem_capacity()
    budget = block_budget if block_budget is not None else (8 << 20)

    fused_need = 4 * C * Lp * itemsize + 2 * C * Lp * 4 + (4 << 20)
    if (not force_two_pass) and fused_need <= vmem_cap - (8 << 20):
        return _fused_path(x, w, b, L, Lp, vmem_cap)
    return _two_pass_path(x, w, b, L, Lp, vmem_cap, budget)


def spatial_gate_reference(x, w, b):
    """Pure-JAX reference mirroring the PyTorch module."""
    mx = jnp.max(x, axis=1, keepdims=True)        # (N, 1, L)
    mn = jnp.mean(x, axis=1, keepdims=True)       # (N, 1, L)
    pooled = jnp.concatenate([mx, mn], axis=1)    # (N, 2, L)
    conv = lax.conv_general_dilated(
        pooled, w[None, :, :],                    # (O=1, I=2, K=7)
        window_strides=(1,), padding=[(PAD, PAD)],
        dimension_numbers=("NCH", "OIH", "NCH"))
    conv = conv + b[None, :, None]                # (N, 1, L)
    return x * jax.nn.sigmoid(conv)


if __name__ == "__main__":
    key = jax.random.PRNGKey(0)
    kx, kw, kb = jax.random.split(key, 3)

    bound = 1.0 / (2 * KSIZE) ** 0.5
    w = jax.random.uniform(kw, (2, KSIZE), jnp.float32, -bound, bound)
    b = jax.random.uniform(kb, (1,), jnp.float32, -bound, bound)

    # 1) fused path, lane-aligned L; 2) fused path, ragged L (in-kernel masking).
    for (N, C, L) in [(2, 4, 256), (1, 6, 100)]:
        x = jax.random.normal(jax.random.fold_in(kx, L), (N, C, L), jnp.float32)
        out = jax.block_until_ready(spatial_gate(x, w, b))
        ref = spatial_gate_reference(x, w, b)
        assert out.shape == (N, C, L)
        assert jnp.allclose(out, ref, atol=1e-5, rtol=1e-5), f"fused mismatch {(N, C, L)}"

    # 3) two-pass fallback forced with a tiny block budget: multiple C tiles
    #    (non-divisor -> channel masking), multiple L tiles, ragged L.
    N, C, L = 2, 20, 300
    x = jax.random.normal(jax.random.fold_in(kx, 999), (N, C, L), jnp.float32)
    out = jax.block_until_ready(
        spatial_gate(x, w, b, force_two_pass=True, block_budget=8 << 10))
    ref = spatial_gate_reference(x, w, b)
    assert jnp.allclose(out, ref, atol=1e-5, rtol=1e-5), "two-pass mismatch"

    # 4) bf16 I/O through the fused path (compute stays f32 in-kernel).
    N, C, L = 2, 8, 128
    xb16 = jax.random.normal(jax.random.fold_in(kx, 7), (N, C, L),
                             jnp.float32).astype(jnp.bfloat16)
    out = jax.block_until_ready(spatial_gate(xb16, w, b))
    ref = spatial_gate_reference(xb16.astype(jnp.float32), w, b).astype(jnp.bfloat16)
    assert out.dtype == jnp.bfloat16
    assert jnp.allclose(out.astype(jnp.float32), ref.astype(jnp.float32),
                        atol=2e-2, rtol=2e-2), "bf16 mismatch"

    print("KERNEL_OK")
</pallas_src>

<mosaic_0001>
module attributes {stable_mosaic.version = 11 : i64} {
  func.func @kernel(%arg0: i32, %arg1: memref<1x4x256xf32, #tpu.memory_space<vmem>>, %arg2: memref<2x7xf32, #tpu.memory_space<smem>>, %arg3: memref<1xf32, #tpu.memory_space<smem>>, %arg4: memref<1x4x256xf32, #tpu.memory_space<vmem>>) attributes {dimension_semantics = [#tpu.dimension_semantics<parallel>], iteration_bounds = array<i64: 2>, scalar_prefetch = 0 : i64, scratch_operands = 0 : i64, tpu.core_type = #tpu.core_type<tc>, window_params = [{transform_indices = @transform_0, window_bounds = array<i64: 1, 4, 256>}, {transform_indices = @transform_1, window_bounds = array<i64: 2, 7>}, {transform_indices = @transform_2, window_bounds = array<i64: 1>}, {transform_indices = @transform_3, window_bounds = array<i64: 1, 4, 256>}]} {
    %c0 = arith.constant 0 : index
    %c0_0 = arith.constant 0 : index
    %c0_1 = arith.constant 0 : index
    %0 = vector.load %arg1[%c0, %c0_0, %c0_1] : memref<1x4x256xf32, #tpu.memory_space<vmem>>, vector<1x4x256xf32>
    %cst = arith.constant dense<0xFF800000> : vector<1x256xf32>
    %1 = vector.multi_reduction <maximumf>, %0, %cst [1] : vector<1x4x256xf32> to vector<1x256xf32>
    %2 = vector.shape_cast %1 : vector<1x256xf32> to vector<1x1x256xf32>
    %cst_2 = arith.constant dense<0.000000e+00> : vector<1x256xf32>
    %3 = vector.multi_reduction <add>, %0, %cst_2 [1] : vector<1x4x256xf32> to vector<1x256xf32>
    %4 = vector.shape_cast %3 : vector<1x256xf32> to vector<1x1x256xf32>
    %cst_3 = arith.constant 2.500000e-01 : f32
    %5 = vector.broadcast %cst_3 : f32 to vector<1x1x256xf32>
    %6 = arith.mulf %4, %5 : vector<1x1x256xf32>
    %7 = tpu.concatenate %2, %6 in 1 : vector<1x1x256xf32>, vector<1x1x256xf32> -> vector<1x2x256xf32>
    %8 = tpu.iota {dimensions = array<i32: 2>} : vector<1x1x256xi32>
    %c0_4 = arith.constant 0 : index
    %c0_5 = arith.constant 0 : index
    %9 = memref.load %arg2[%c0_4, %c0_5] : memref<2x7xf32, #tpu.memory_space<smem>>
    %c0_6 = arith.constant 0 : index
    %c1 = arith.constant 1 : index
    %10 = memref.load %arg2[%c0_6, %c1] : memref<2x7xf32, #tpu.memory_space<smem>>
    %c0_7 = arith.constant 0 : index
    %c2 = arith.constant 2 : index
    %11 = memref.load %arg2[%c0_7, %c2] : memref<2x7xf32, #tpu.memory_space<smem>>
    %c0_8 = arith.constant 0 : index
    %c3 = arith.constant 3 : index
    %12 = memref.load %arg2[%c0_8, %c3] : memref<2x7xf32, #tpu.memory_space<smem>>
    %c0_9 = arith.constant 0 : index
    %c4 = arith.constant 4 : index
    %13 = memref.load %arg2[%c0_9, %c4] : memref<2x7xf32, #tpu.memory_space<smem>>
    %c0_10 = arith.constant 0 : index
    %c5 = arith.constant 5 : index
    %14 = memref.load %arg2[%c0_10, %c5] : memref<2x7xf32, #tpu.memory_space<smem>>
    %c0_11 = arith.constant 0 : index
    %c6 = arith.constant 6 : index
    %15 = memref.load %arg2[%c0_11, %c6] : memref<2x7xf32, #tpu.memory_space<smem>>
    %c1_12 = arith.constant 1 : index
    %c0_13 = arith.constant 0 : index
    %16 = memref.load %arg2[%c1_12, %c0_13] : memref<2x7xf32, #tpu.memory_space<smem>>
    %c1_14 = arith.constant 1 : index
    %c1_15 = arith.constant 1 : index
    %17 = memref.load %arg2[%c1_14, %c1_15] : memref<2x7xf32, #tpu.memory_space<smem>>
    %c1_16 = arith.constant 1 : index
    %c2_17 = arith.constant 2 : index
    %18 = memref.load %arg2[%c1_16, %c2_17] : memref<2x7xf32, #tpu.memory_space<smem>>
    %c1_18 = arith.constant 1 : index
    %c3_19 = arith.constant 3 : index
    %19 = memref.load %arg2[%c1_18, %c3_19] : memref<2x7xf32, #tpu.memory_space<smem>>
    %c1_20 = arith.constant 1 : index
    %c4_21 = arith.constant 4 : index
    %20 = memref.load %arg2[%c1_20, %c4_21] : memref<2x7xf32, #tpu.memory_space<smem>>
    %c1_22 = arith.constant 1 : index
    %c5_23 = arith.constant 5 : index
    %21 = memref.load %arg2[%c1_22, %c5_23] : memref<2x7xf32, #tpu.memory_space<smem>>
    %c1_24 = arith.constant 1 : index
    %c6_25 = arith.constant 6 : index
    %22 = memref.load %arg2[%c1_24, %c6_25] : memref<2x7xf32, #tpu.memory_space<smem>>
    %c0_26 = arith.constant 0 : index
    %23 = memref.load %arg3[%c0_26] : memref<1xf32, #tpu.memory_space<smem>>
    %24 = vector.broadcast %23 : f32 to vector<1x1x256xf32>
    %c3_i32 = arith.constant 3 : i32
    %25 = tpu.dynamic_rotate %7 by %c3_i32 dim 2 : vector<1x2x256xf32>, i32 -> vector<1x2x256xf32>
    %c3_i32_27 = arith.constant 3 : i32
    %26 = vector.broadcast %c3_i32_27 : i32 to vector<1x1x256xi32>
    %27 = arith.cmpi sge, %8, %26 : vector<1x1x256xi32>
    %cst_28 = arith.constant 0.000000e+00 : f32
    %28 = vector.shape_cast %27 : vector<1x1x256xi1> to vector<1x1x256xi1>
    %29 = vector.broadcast %28 : vector<1x1x256xi1> to vector<1x2x256xi1>
    %30 = vector.broadcast %cst_28 : f32 to vector<1x2x256xf32>
    %31 = arith.select %29, %25, %30 : vector<1x2x256xi1>, vector<1x2x256xf32>
    %32 = vector.extract_strided_slice %31 {offsets = [0, 0, 0], sizes = [1, 1, 256], strides = [1, 1, 1]} : vector<1x2x256xf32> to vector<1x1x256xf32>
    %33 = vector.broadcast %9 : f32 to vector<1x1x256xf32>
    %34 = arith.mulf %33, %32 : vector<1x1x256xf32>
    %35 = arith.addf %24, %34 : vector<1x1x256xf32>
    %36 = vector.extract_strided_slice %31 {offsets = [0, 1, 0], sizes = [1, 1, 256], strides = [1, 1, 1]} : vector<1x2x256xf32> to vector<1x1x256xf32>
    %37 = vector.broadcast %16 : f32 to vector<1x1x256xf32>
    %38 = arith.mulf %37, %36 : vector<1x1x256xf32>
    %39 = arith.addf %35, %38 : vector<1x1x256xf32>
    %c2_i32 = arith.constant 2 : i32
    %40 = tpu.dynamic_rotate %7 by %c2_i32 dim 2 : vector<1x2x256xf32>, i32 -> vector<1x2x256xf32>
    %c2_i32_29 = arith.constant 2 : i32
    %41 = vector.broadcast %c2_i32_29 : i32 to vector<1x1x256xi32>
    %42 = arith.cmpi sge, %8, %41 : vector<1x1x256xi32>
    %cst_30 = arith.constant 0.000000e+00 : f32
    %43 = vector.shape_cast %42 : vector<1x1x256xi1> to vector<1x1x256xi1>
    %44 = vector.broadcast %43 : vector<1x1x256xi1> to vector<1x2x256xi1>
    %45 = vector.broadcast %cst_30 : f32 to vector<1x2x256xf32>
    %46 = arith.select %44, %40, %45 : vector<1x2x256xi1>, vector<1x2x256xf32>
    %47 = vector.extract_strided_slice %46 {offsets = [0, 0, 0], sizes = [1, 1, 256], strides = [1, 1, 1]} : vector<1x2x256xf32> to vector<1x1x256xf32>
    %48 = vector.broadcast %10 : f32 to vector<1x1x256xf32>
    %49 = arith.mulf %48, %47 : vector<1x1x256xf32>
    %50 = arith.addf %39, %49 : vector<1x1x256xf32>
    %51 = vector.extract_strided_slice %46 {offsets = [0, 1, 0], sizes = [1, 1, 256], strides = [1, 1, 1]} : vector<1x2x256xf32> to vector<1x1x256xf32>
    %52 = vector.broadcast %17 : f32 to vector<1x1x256xf32>
    %53 = arith.mulf %52, %51 : vector<1x1x256xf32>
    %54 = arith.addf %50, %53 : vector<1x1x256xf32>
    %c1_i32 = arith.constant 1 : i32
    %55 = tpu.dynamic_rotate %7 by %c1_i32 dim 2 : vector<1x2x256xf32>, i32 -> vector<1x2x256xf32>
    %c1_i32_31 = arith.constant 1 : i32
    %56 = vector.broadcast %c1_i32_31 : i32 to vector<1x1x256xi32>
    %57 = arith.cmpi sge, %8, %56 : vector<1x1x256xi32>
    %cst_32 = arith.constant 0.000000e+00 : f32
    %58 = vector.shape_cast %57 : vector<1x1x256xi1> to vector<1x1x256xi1>
    %59 = vector.broadcast %58 : vector<1x1x256xi1> to vector<1x2x256xi1>
    %60 = vector.broadcast %cst_32 : f32 to vector<1x2x256xf32>
    %61 = arith.select %59, %55, %60 : vector<1x2x256xi1>, vector<1x2x256xf32>
    %62 = vector.extract_strided_slice %61 {offsets = [0, 0, 0], sizes = [1, 1, 256], strides = [1, 1, 1]} : vector<1x2x256xf32> to vector<1x1x256xf32>
    %63 = vector.broadcast %11 : f32 to vector<1x1x256xf32>
    %64 = arith.mulf %63, %62 : vector<1x1x256xf32>
    %65 = arith.addf %54, %64 : vector<1x1x256xf32>
    %66 = vector.extract_strided_slice %61 {offsets = [0, 1, 0], sizes = [1, 1, 256], strides = [1, 1, 1]} : vector<1x2x256xf32> to vector<1x1x256xf32>
    %67 = vector.broadcast %18 : f32 to vector<1x1x256xf32>
    %68 = arith.mulf %67, %66 : vector<1x1x256xf32>
    %69 = arith.addf %65, %68 : vector<1x1x256xf32>
    %70 = vector.extract_strided_slice %7 {offsets = [0, 0, 0], sizes = [1, 1, 256], strides = [1, 1, 1]} : vector<1x2x256xf32> to vector<1x1x256xf32>
    %71 = vector.broadcast %12 : f32 to vector<1x1x256xf32>
    %72 = arith.mulf %71, %70 : vector<1x1x256xf32>
    %73 = arith.addf %69, %72 : vector<1x1x256xf32>
    %74 = vector.extract_strided_slice %7 {offsets = [0, 1, 0], sizes = [1, 1, 256], strides = [1, 1, 1]} : vector<1x2x256xf32> to vector<1x1x256xf32>
    %75 = vector.broadcast %19 : f32 to vector<1x1x256xf32>
    %76 = arith.mulf %75, %74 : vector<1x1x256xf32>
    %77 = arith.addf %73, %76 : vector<1x1x256xf32>
    %c255_i32 = arith.constant 255 : i32
    %78 = tpu.dynamic_rotate %7 by %c255_i32 dim 2 : vector<1x2x256xf32>, i32 -> vector<1x2x256xf32>
    %c255_i32_33 = arith.constant 255 : i32
    %79 = vector.broadcast %c255_i32_33 : i32 to vector<1x1x256xi32>
    %80 = arith.cmpi slt, %8, %79 : vector<1x1x256xi32>
    %cst_34 = arith.constant 0.000000e+00 : f32
    %81 = vector.shape_cast %80 : vector<1x1x256xi1> to vector<1x1x256xi1>
    %82 = vector.broadcast %81 : vector<1x1x256xi1> to vector<1x2x256xi1>
    %83 = vector.broadcast %cst_34 : f32 to vector<1x2x256xf32>
    %84 = arith.select %82, %78, %83 : vector<1x2x256xi1>, vector<1x2x256xf32>
    %85 = vector.extract_strided_slice %84 {offsets = [0, 0, 0], sizes = [1, 1, 256], strides = [1, 1, 1]} : vector<1x2x256xf32> to vector<1x1x256xf32>
    %86 = vector.broadcast %13 : f32 to vector<1x1x256xf32>
    %87 = arith.mulf %86, %85 : vector<1x1x256xf32>
    %88 = arith.addf %77, %87 : vector<1x1x256xf32>
    %89 = vector.extract_strided_slice %84 {offsets = [0, 1, 0], sizes = [1, 1, 256], strides = [1, 1, 1]} : vector<1x2x256xf32> to vector<1x1x256xf32>
    %90 = vector.broadcast %20 : f32 to vector<1x1x256xf32>
    %91 = arith.mulf %90, %89 : vector<1x1x256xf32>
    %92 = arith.addf %88, %91 : vector<1x1x256xf32>
    %c254_i32 = arith.constant 254 : i32
    %93 = tpu.dynamic_rotate %7 by %c254_i32 dim 2 : vector<1x2x256xf32>, i32 -> vector<1x2x256xf32>
    %c254_i32_35 = arith.constant 254 : i32
    %94 = vector.broadcast %c254_i32_35 : i32 to vector<1x1x256xi32>
    %95 = arith.cmpi slt, %8, %94 : vector<1x1x256xi32>
    %cst_36 = arith.constant 0.000000e+00 : f32
    %96 = vector.shape_cast %95 : vector<1x1x256xi1> to vector<1x1x256xi1>
    %97 = vector.broadcast %96 : vector<1x1x256xi1> to vector<1x2x256xi1>
    %98 = vector.broadcast %cst_36 : f32 to vector<1x2x256xf32>
    %99 = arith.select %97, %93, %98 : vector<1x2x256xi1>, vector<1x2x256xf32>
    %100 = vector.extract_strided_slice %99 {offsets = [0, 0, 0], sizes = [1, 1, 256], strides = [1, 1, 1]} : vector<1x2x256xf32> to vector<1x1x256xf32>
    %101 = vector.broadcast %14 : f32 to vector<1x1x256xf32>
    %102 = arith.mulf %101, %100 : vector<1x1x256xf32>
    %103 = arith.addf %92, %102 : vector<1x1x256xf32>
    %104 = vector.extract_strided_slice %99 {offsets = [0, 1, 0], sizes = [1, 1, 256], strides = [1, 1, 1]} : vector<1x2x256xf32> to vector<1x1x256xf32>
    %105 = vector.broadcast %21 : f32 to vector<1x1x256xf32>
    %106 = arith.mulf %105, %104 : vector<1x1x256xf32>
    %107 = arith.addf %103, %106 : vector<1x1x256xf32>
    %c253_i32 = arith.constant 253 : i32
    %108 = tpu.dynamic_rotate %7 by %c253_i32 dim 2 : vector<1x2x256xf32>, i32 -> vector<1x2x256xf32>
    %c253_i32_37 = arith.constant 253 : i32
    %109 = vector.broadcast %c253_i32_37 : i32 to vector<1x1x256xi32>
    %110 = arith.cmpi slt, %8, %109 : vector<1x1x256xi32>
    %cst_38 = arith.constant 0.000000e+00 : f32
    %111 = vector.shape_cast %110 : vector<1x1x256xi1> to vector<1x1x256xi1>
    %112 = vector.broadcast %111 : vector<1x1x256xi1> to vector<1x2x256xi1>
    %113 = vector.broadcast %cst_38 : f32 to vector<1x2x256xf32>
    %114 = arith.select %112, %108, %113 : vector<1x2x256xi1>, vector<1x2x256xf32>
    %115 = vector.extract_strided_slice %114 {offsets = [0, 0, 0], sizes = [1, 1, 256], strides = [1, 1, 1]} : vector<1x2x256xf32> to vector<1x1x256xf32>
    %116 = vector.broadcast %15 : f32 to vector<1x1x256xf32>
    %117 = arith.mulf %116, %115 : vector<1x1x256xf32>
    %118 = arith.addf %107, %117 : vector<1x1x256xf32>
    %119 = vector.extract_strided_slice %114 {offsets = [0, 1, 0], sizes = [1, 1, 256], strides = [1, 1, 1]} : vector<1x2x256xf32> to vector<1x1x256xf32>
    %120 = vector.broadcast %22 : f32 to vector<1x1x256xf32>
    %121 = arith.mulf %120, %119 : vector<1x1x256xf32>
    %122 = arith.addf %118, %121 : vector<1x1x256xf32>
    %123 = arith.negf %122 : vector<1x1x256xf32>
    %124 = math.exp %123 : vector<1x1x256xf32>
    %cst_39 = arith.constant 1.000000e+00 : f32
    %125 = vector.broadcast %cst_39 : f32 to vector<1x1x256xf32>
    %126 = arith.addf %125, %124 : vector<1x1x256xf32>
    %127 = arith.divf %125, %126 : vector<1x1x256xf32>
    %128 = vector.broadcast %127 : vector<1x1x256xf32> to vector<1x4x256xf32>
    %129 = arith.mulf %0, %128 : vector<1x4x256xf32>
    %c0_40 = arith.constant 0 : index
    %c0_41 = arith.constant 0 : index
    %c0_42 = arith.constant 0 : index
    %130 = vector.load %arg4[%c0_40, %c0_41, %c0_42] : memref<1x4x256xf32, #tpu.memory_space<vmem>>, vector<1x4x256xf32>
    tpu.vector_store %arg4[%c0_40, %c0_41, %c0_42], %129 {strides = array<i32>} : memref<1x4x256xf32, #tpu.memory_space<vmem>>, vector<1x4x256xf32>,
    return
  }
  func.func @transform_0(%arg0: i32) -> (i32, i32, i32) {
    %c0_i32 = arith.constant 0 : i32
    %c0_i32_0 = arith.constant 0 : i32
    %c0_i32_1 = arith.constant 0 : i32
    return %arg0, %c0_i32, %c0_i32_0 : i32, i32, i32
  }
  func.func @transform_1(%arg0: i32) -> (i32, i32) {
    %c0_i32 = arith.constant 0 : i32
    %c0_i32_0 = arith.constant 0 : i32
    %c0_i32_1 = arith.constant 0 : i32
    return %c0_i32, %c0_i32_0 : i32, i32
  }
  func.func @transform_2(%arg0: i32) -> i32 {
    %c0_i32 = arith.constant 0 : i32
    %c0_i32_0 = arith.constant 0 : i32
    return %c0_i32 : i32
  }
  func.func @transform_3(%arg0: i32) -> (i32, i32, i32) {
    %c0_i32 = arith.constant 0 : i32
    %c0_i32_0 = arith.constant 0 : i32
    %c0_i32_1 = arith.constant 0 : i32
    return %arg0, %c0_i32, %c0_i32_0 : i32, i32, i32
  }
}

</mosaic_0001>

<bundles_post_ra>
// kernel: tpu_custom_call.1
= control target key start
LH: loop header
LB: loop body
LE: loop exit
PB: predicated region body
PF: predicated region fallthrough
CT: control target
= control target key end

     0   :  { %s1157_s0 = inlined_call_operand.hbm [shape: f32[2,4,256], index: 0, kind: input, shape index: {}]   ;;  %s1158_s1 = inlined_call_operand.vmem [shape: f32[2,7], index: 1, kind: input, shape index: {}]   ;;  %s1159_s2 = inlined_call_operand.<no memory space> [shape: f32[1], index: 2, kind: input, shape index: {}]   ;;  %s1160_s3 = inlined_call_operand.hbm [shape: f32[2,4,256], index: 3, kind: output, shape index: {}]  }
   0x1   :  { %8 = sst [smem:[#allocation2]] %s1159_s2 }
   0x2   :  { %9 = vsyncpa [#allocation4], 0 }
   0x3   :  { %11 = vsyncpa [#allocation4 + $0x1], 0 }
   0x4   :  { %12 = vsyncpa [#allocation6], 0 }
   0x5   :  { %13 = vsyncpa [#allocation5], 0 }
   0x6   :  { %15 = vsyncpa [#allocation5 + $0x1], 0  ;;  %s838_s14 = smov 0   ;;  %s840_s15 = smov 0  }
   0x7   :  { %s842_s16 = smov 0   ;;  %s844_s17 = smov 0  }
   0x8 LB: > { %s859_s2 = sadd.s32 4294967295, %s804_s17   ;;  %s584_s18 = sadd.s32 4294967294, %s804_s17   ;;  %s804_s17 = sphi %s844_s17, %s1181_s17   ;;  %s800_s16 = sphi %s842_s16, %s1180_s16   ;;  %s796_s15 = sphi %s840_s15, %s1179_s15   ;;  %s792_s14 = sphi %s838_s14, %s1178_s14  }
   0x9   : > { %p41_p0 = scmp.ne.s32.totalorder %s796_s15, %s792_s14  ;;  %p1161_p1 = scmp.eq.s32.totalorder %s859_s2, 0 }
   0xa   : > { %p113_p3 = scmp.eq.s32.totalorder %s584_s18, 1  ;;  %p585_p5 = scmp.ge.s32.totalorder %s804_s17, 1 }
   0xb   : > { %p868_p4 = por %p1161_p1, %p41_p0  ;;  %p120_p7 = scmp.lt.s32.totalorder %s804_s17, 3 }
   0xc   : > { %p873_p6 = por %p113_p3, %p41_p0  ;;  %s133_s23 = sshll.u32 %s1158_s1, 4  ;;  %s134_s23 = int_to_ptr.vmem [resolvable:$true] %s133_s23 }
   0xd   : > { %s1164_s19 = scalar_select %p868_p4, 1, 0 }
   0xe   : > { %s1165_s20 = scalar_select %p873_p6, 1, 0 }
   0xf   : > { %p881_p8 = pnand %p585_p5, %p120_p7  ;;  %s889_s25 = sadd.s32 1, %s804_s17  }
  0x10   : > { %s25_s27 = ssub.s32 %s804_s17, %s889_s25  ;;  %s28_s29 = sadd.s32 1, %s800_s16 }
  0x11   : > { %p625_p10 = pneg %p881_p8  ;;  %p899_p12 = scmp.eq.s32.totalorder %s25_s27, 0 }
  0x12   : > { %p35_p13 = scmp.ne.s32.totalorder %s800_s16, %s796_s15  ;;  %s689_s30 = scalar_lea.vmem %s134_s23, 32 }
  0x13   : > { %p893_p11 = pnand %p625_p10, %p1161_p1  ;;  %p690_p0 = scmp.ne.s32.totalorder %s134_s23, %s689_s30 }
  0x14   : > { %p697_p9 = scmp.lt.s32.totalorder %s134_s23, %s134_s23  ;;  %p698_p2 = scmp.lt.s32.totalorder %s689_s30, %s689_s30 }
  0x15   : > { %p691_p3 = pneg %p893_p11 }
  0x16   : > { %p699_p10 = por %p698_p2, %p697_p9 }
  0x17   : > { %p692_p5 = pnand %p691_p3, %p690_p0 }
  0x19   : > { %p693_p7 = pneg %p692_p5 }
  0x1b   : > { %p700_p1 = pnand %p699_p10, %p693_p7 }
  0x1d   : > { %703 = shalt.err (!%p700_p1)
}
  0x1e   : > { %s806_s4 = smov [#allocation7]   ;;  %p36_p2 = scmp.eq.s32.totalorder %s804_s17, 0 }
  0x1f   : > { %628 = dma.vmem_to_smem (!%p893_p11), %s134_s23, 32, %s806_s4, [#allocation6]  }
  0x20   : > { %s913_s5 = scalar_select %p899_p12, %s800_s16, %s28_s29  }
  0x21   : > { %p1169_p1 = scmp.eq.s32.totalorder %s859_s2, 1  ;;  %p638_p0 = scmp.lt.s32.totalorder %s804_s17, 2 }
  0x22   : > { %s147_s7 = sand.u32 1, %s800_s16   ;;  %p37_p3 = por %p36_p2, %p35_p13 }
  0x23   : > { %p921_p9 = por %p1169_p1, %p35_p13  ;;  %s588_s8 = sshll.u32 %s147_s7, 3 }
  0x24   : > { %s615_s9 = sshll.u32 %s804_s17, 7  ;;  %s151_s13 = scalar_lea.vmem [#allocation3], %s588_s8 }
  0x25   : > { %s1170_s6 = scalar_select %p921_p9, 1, 0 }
  0x26   : > { %s934_s12 = scalar_lea.hbm %s1157_s0, %s615_s9  ;;  %s159_s18 = sshll.u32 %s151_s13, 4  ;;  %s940_s18 = int_to_ptr.vmem [resolvable:$true] %s159_s18 }
  0x27   : > { %p936_p11 = pnand %p638_p0, %p37_p3  ;;  %s148_s22 = scalar_lea.sflag [#allocation4], %s147_s7 }
  0x28   : > { %s704_s23 = scalar_lea.hbm %s934_s12, 128  ;;  %s709_s28 = scalar_lea.hbm %s1157_s0, 256 }
  0x29   : > { %p705_p12 = scmp.ne.s32.totalorder %s934_s12, %s704_s23  ;;  %p706_p13 = pneg %p936_p11 }
  0x2a   : > { %p710_p10 = scmp.lt.u32.totalorder %s934_s12, %s1157_s0  ;;  %p711_p2 = scmp.lt.u32.totalorder %s709_s28, %s704_s23 }
  0x2b   : > { %p707_p5 = pnand %p706_p13, %p705_p12  ;;  %p713_p0 = scmp.lt.u32.totalorder %s704_s23, %s934_s12 }
  0x2c   : > { %p712_p1 = por %p711_p2, %p710_p10 }
  0x2d   : > { %p708_p7 = pneg %p707_p5 }
  0x2e   : > { %p714_p3 = por %p713_p0, %p712_p1 }
  0x30   : > { %p715_p6 = pnand %p714_p3, %p708_p7 }
  0x32   : > { %718 = shalt.err (!%p715_p6)
}
  0x33   : > { %s719_s4 = scalar_lea.vmem %s940_s18, 128  ;;  %s807_s7 = smov [#allocation3]  }
  0x34   : > { %p720_p12 = scmp.ne.s32.totalorder %s940_s18, %s719_s4  ;;  %s724_s8 = sshll.u32 %s807_s7, 4  ;;  %s725_s8 = int_to_ptr.vmem [resolvable:$false] %s724_s8 }
  0x35   : > { %s726_s9 = scalar_lea.vmem %s725_s8, 256  ;;  %p727_p4 = scmp.lt.s32.totalorder %s940_s18, %s725_s8 }
  0x36   : > { %p722_p5 = pnand %p720_p12, %p706_p13  ;;  %p728_p10 = scmp.lt.s32.totalorder %s726_s9, %s719_s4 }
  0x38   : > { %p723_p9 = pneg %p722_p5  ;;  %p729_p2 = por %p728_p10, %p727_p4 }
  0x3a   : > { %p730_p1 = pnand %p729_p2, %p723_p9 }
  0x3c   : > { %733 = shalt.err (!%p730_p1)
}
  0x3d   : > { %632 = dma.hbm_to_vmem [thread:$0]  (!%p936_p11), %s934_s12, 128, %s940_s18, %s148_s22  }
  0x3e   : > { %168 = sbr.rel (%p881_p8) target bundleno = 291 (0x123), region = 32  ;;  %s970_s10 = sand.u32 (!%p881_p8), 1, %s796_s15  }
  0x3f   : > { %s592_s11 = sshll.u32 (!%p881_p8), %s970_s10, 3  ;;  %s171_s13 = scalar_lea.sflag (!%p881_p8), [#allocation4], %s970_s10 }
  0x40   : > { %s174_s23 = scalar_lea.vmem (!%p881_p8), [#allocation3], %s592_s11  ;;  %p1172_p4 = scmp.ne.s32.totalorder (!%p881_p8), %s1164_s19, 0 }
  0x45   : > { %779 = dma.done.wait (%p1172_p4), %s171_s13, 128  }
  0x46   : > { %781 = vsyncadd (%p1172_p4), %s171_s13, 4294967168  ;;  %p1173_p6 = scmp.eq.s32.totalorder %s859_s2, 0 }
  0x48   : > { %783 = dma.done.wait (%p1173_p6), [#allocation6], 32   ;;  %p1174_p8 = pmov %p1173_p6 }
  0x4a   : > { %785 = vsyncadd (%p1174_p8), [#allocation6], 4294967264 }
  0x4b   : > { %183 = sfence }
  0x4c   : > { %v984_v0 = vld [vmem:[%s174_s23] sm:$0xff]  ;;  %vm206_vm0 = vcmask 1043456   ;;  %vm237_vm1 = vcmask 1040384   ;;  %s808_s19 = smov 2   ;;  %s809_s24 = smov 3   ;;  %v240_v34 = vlaneseq }
  0x4d   : > { %v207_v1 = vsel %vm206_vm0, %v984_v0, -inf  ;;  %v221_v2 = vsel %vm206_vm0, %v984_v0, 0.0  ;;  %v204_v3 = vcombine.high %v984_v0, %v984_v0  ;;  %s810_s12 = smov 1   ;;  %s811_s18 = smov 127  }
  0x4e   : > { %v208_v4 = vrot.slane %v207_v1, 4  ;;  %v222_v5 = vrot.slane %v221_v2, 4  ;;  %s812_s21 = smov 126   ;;  %s813_s22 = smov 125   ;;  %v1021_v35 = vand.u32 127, %v240_v34 }
  0x4f   : > { %v214_v6 = vsel %vm206_vm0, %v204_v3, -inf  ;;  %v228_v7 = vsel %vm206_vm0, %v204_v3, 0.0  ;;  %s1006_s26 = sld [smem:[#allocation7 + $0x1]]  ;;  %s1010_s28 = sld [smem:[#allocation7]] }
  0x50   : > { %v209_v8 = vmax.f32 %v207_v1, %v208_v4  ;;  %v223_v9 = vadd.f32 %v222_v5, %v221_v2  ;;  %v215_v10 = vrot.slane %v214_v6, 4  ;;  %v229_v11 = vrot.slane %v228_v7, 4  ;;  %s1008_s27 = sld [smem:[#allocation7 + $0x81]]  ;;  %s1012_s29 = sld [smem:[#allocation7 + $0x80]] }
  0x51   : > { %s1014_s30 = sld [smem:[#allocation2]]  ;;  %s1016_s4 = sld [smem:[#allocation7 + $0x2]]  ;;  %vm294_vm2 = vcmp.lt.s32.totalorder %v1021_v35, 2  ;;  %vm297_vm3 = vcmp.ge.s32.totalorder %v1021_v35, 2  ;;  %vm263_vm4 = vcmp.lt.s32.totalorder %v1021_v35, 3  ;;  %vm266_vm5 = vcmp.ge.s32.totalorder %v1021_v35, 3 }
  0x52   : > { %v210_v12 = vrot.slane %v209_v8, 2  ;;  %v224_v13 = vrot.slane %v223_v9, 2  ;;  %v216_v14 = vmax.f32 %v214_v6, %v215_v10  ;;  %v230_v15 = vadd.f32 %v229_v11, %v228_v7  ;;  %s1018_s7 = sld [smem:[#allocation7 + $0x83]]  ;;  %s1025_s9 = sld [smem:[#allocation7 + $0x82]] }
  0x53   : > { %s1023_s8 = sld [smem:[#allocation7 + $0x3]]  ;;  %vm325_vm6 = vcmp.lt.s32.totalorder %v1021_v35, 1  ;;  %vm328_vm7 = vcmp.ge.s32.totalorder %v1021_v35, 1  ;;  %v1049_v57 = vadd.s32 128, %v1021_v35  ;;  %s1051_s13 = sld [smem:[#allocation7 + $0x84]]  ;;  %vm372_vm8 = vcmp.lt.s32.totalorder %v1021_v35, 127 }
  0x54   : > { %v211_v16 = vmax.f32 %v209_v8, %v210_v12  ;;  %v225_v17 = vadd.f32 %v224_v13, %v223_v9  ;;  %v217_v18 = vrot.slane %v216_v14, 2  ;;  %v231_v19 = vrot.slane %v230_v15, 2  ;;  %s1063_s23 = sld [smem:[#allocation7 + $0x4]]  ;;  %p1175_p11 = scmp.ne.s32.totalorder %s1170_s6, 0 }
  0x55   : > { %v305_v38 = vstv %s1006_s26  ;;  %v274_v41 = vstv %s1010_s28  ;;  %vm376_vm9 = vcmp.lt.s32.totalorder %v1049_v57, 255  ;;  %vm403_vm10 = vcmp.lt.s32.totalorder %v1021_v35, 126 }
  0x56   : > { %v212_v20 = vrot.slane %v211_v16, 1  ;;  %v226_v21 = vrot.slane %v225_v17, 1  ;;  %v218_v22 = vmax.f32 %v216_v14, %v217_v18  ;;  %v232_v23 = vadd.f32 %v231_v19, %v230_v15 }
  0x57   : > { %v310_v39 = vstv %s1008_s27  ;;  %v258_v40 = vstv %s1014_s30  ;;  %v279_v42 = vstv %s1012_s29  ;;  %v336_v45 = vstv %s1016_s4  ;;  %s488_s30 = scalar_lea.sflag [#allocation5], %s970_s10 }
  0x58   : > { %v213_v24 = vmax.f32 %v211_v16, %v212_v20  ;;  %v227_v25 = vadd.f32 %v226_v21, %v225_v17  ;;  %v219_v26 = vrot.slane %v218_v22, 1  ;;  %v233_v27 = vrot.slane %v232_v23, 1 }
  0x59   : > { %v357_v46 = vstv %s1018_s7  ;;  %v341_v53 = vstv %s1025_s9  ;;  %v352_v54 = vstv %s1023_s8  ;;  %vm407_vm11 = vcmp.lt.s32.totalorder %v1049_v57, 254 }
  0x5a   : > { %v235_v28 = vmul.f32 0.25, %v227_v25  ;;  %v220_v29 = vmax.f32 %v218_v22, %v219_v26  ;;  %v234_v30 = vadd.f32 %v233_v27, %v232_v23  ;;  %v388_v27 = vstv %s1051_s13 }
  0x5b   : > { %vm434_vm12 = vcmp.lt.s32.totalorder %v1021_v35, 125  ;;  %vm438_vm13 = vcmp.lt.s32.totalorder %v1049_v57, 253 }
  0x5c   : > { %v990_v31 = vsel %vm237_vm1, %v213_v24, %v235_v28  ;;  %v236_v32 = vmul.f32 0.25, %v234_v30 }
  0x5d   : > { %290 = vrot.lane.b32.xlu1 %v990_v31, %s808_s19  ;;  %259 = vrot.lane.b32.xlu0 %v990_v31, %s809_s24  ;;  %v1057_v1 = vmul.f32 %v357_v46, %v990_v31  ;;  %v353_v25 = vmul.f32 %v352_v54, %v990_v31 }
  0x5e   : > { %v994_v33 = vsel %vm237_vm1, %v220_v29, %v236_v32 }
  0x5f   : > { %v1054_v58 = vmul.f32 %v357_v46, %v994_v33 }
  0x61   : > { %292 = vrot.lane.b32.xlu1 %v994_v33, %s808_s19  ;;  %261 = vrot.lane.b32.xlu0 %v994_v33, %s809_s24  ;;  %s1069_s19 = sld [smem:[#allocation7 + $0x85]] }
  0x62   : > { %s1078_s24 = sld [smem:[#allocation7 + $0x5]] }
  0x65   : > { %323 = vrot.lane.b32.xlu1 %v994_v33, %s810_s12  ;;  %321 = vrot.lane.b32.xlu0 %v990_v31, %s810_s12  ;;  %s1087_s12 = sld [smem:[#allocation7 + $0x86]] }
  0x69   : > { %370 = vrot.lane.b32.xlu1 %v994_v33, %s811_s18  ;;  %368 = vrot.lane.b32.xlu0 %v990_v31, %s811_s18  ;;  %s1092_s18 = sld [smem:[#allocation7 + $0x6]] }
  0x6d   : > { %401 = vrot.lane.b32.xlu1 %v994_v33, %s812_s21  ;;  %399 = vrot.lane.b32.xlu0 %v990_v31, %s812_s21  ;;  %s616_s21 = sshll.u32 %s859_s2, 7  ;;  %s814_s2 = smov [#allocation8]  }
  0x6e   : > { %s1113_s29 = scalar_lea.hbm %s1160_s3, %s616_s21 }
  0x71   : > { %432 = vrot.lane.b32.xlu1 %v994_v33, %s813_s22  ;;  %430 = vrot.lane.b32.xlu0 %v990_v31, %s813_s22  ;;  %v363_v31 = vrot.slane %v1054_v58, 1  ;;  %s201_s22 = scalar_lea.vmem [#allocation8], %s592_s11  ;;  %s738_s11 = sshll.u32 %s814_s2, 4  ;;  %s739_s11 = int_to_ptr.vmem [resolvable:$false] %s738_s11 }
  0x72   : > { %s502_s26 = sshll.u32 %s201_s22, 4  ;;  %s740_s7 = scalar_lea.vmem %s739_s11, 256  ;;  %s1115_s26 = int_to_ptr.vmem [resolvable:$true] %s502_s26 }
  0x73   : > { %s734_s4 = scalar_lea.vmem %s1115_s26, 128  ;;  %p741_p0 = scmp.lt.s32.totalorder %s1115_s26, %s739_s11 }
  0x74   : > { %p735_p9 = scmp.ne.s32.totalorder %s1115_s26, %s734_s4  ;;  %p742_p3 = scmp.lt.s32.totalorder %s740_s7, %s734_s4 }
  0x76   : > { %p736_p13 = pnand %p735_p9, %p1175_p11  ;;  %p743_p12 = por %p742_p3, %p741_p0 }
  0x78   : > { %p737_p7 = pneg %p736_p13 }
  0x7a   : > { %p744_p5 = pnand %p743_p12, %p737_p7 }
  0xcf   : > { %v291_v36 = vpop.permute.xlu1 %290  ;;  %v260_v37 = vpop.permute.xlu0 %259 }
  0xd3   : > { %v293_v43 = vpop.permute.xlu1 %292  ;;  %v262_v44 = vpop.permute.xlu0 %261 }
  0xd4   : > { %v295_v47 = vsel %vm294_vm2, %v291_v36, %v293_v43  ;;  %v296_v48 = vsel %vm294_vm2, %v293_v43, %v291_v36  ;;  %v264_v49 = vsel %vm263_vm4, %v260_v37, %v262_v44  ;;  %v265_v50 = vsel %vm263_vm4, %v262_v44, %v260_v37 }
  0xd5   : > { %v303_v51 = vsel %vm297_vm3, %v296_v48, 0.0  ;;  %v272_v52 = vsel %vm266_vm5, %v265_v50, 0.0  ;;  %v276_v56 = vmul.f32 %v274_v41, %v264_v49  ;;  %v312_v59 = vmul.f32 %v310_v39, %v295_v47 }
  0xd6   : > { %v275_v55 = vmul.f32 %v274_v41, %v272_v52  ;;  %v280_v60 = vmul.f32 %v279_v42, %v272_v52  ;;  %v281_v61 = vmul.f32 %v279_v42, %v264_v49  ;;  %v311_v2 = vmul.f32 %v310_v39, %v303_v51 }
  0xd7   : > { %v324_v62 = vpop.permute.xlu1 %323  ;;  %v322_v63 = vpop.permute.xlu0 %321  ;;  %v278_v4 = vadd.f32 %v276_v56, %v258_v40  ;;  %v307_v9 = vmul.f32 %v305_v38, %v295_v47  ;;  %v306_v12 = vmul.f32 %v305_v38, %v303_v51  ;;  %v316_v19 = vrot.slane %v312_v59, 1 }
  0xd8   : > { %v277_v3 = vadd.f32 %v275_v55, %v258_v40  ;;  %v326_v5 = vsel %vm325_vm6, %v322_v63, %v324_v62  ;;  %v284_v6 = vrot.slane %v280_v60, 1  ;;  %v285_v7 = vrot.slane %v281_v61, 1 }
  0xd9   : > { %v327_v8 = vsel %vm325_vm6, %v324_v62, %v322_v63  ;;  %v343_v11 = vmul.f32 %v341_v53, %v326_v5  ;;  %v315_v18 = vrot.slane %v311_v2, 1  ;;  %v338_v24 = vmul.f32 %v336_v45, %v326_v5 }
  0xda   : > { %v334_v10 = vsel %vm328_vm7, %v327_v8, 0.0  ;;  %v288_v13 = vadd.f32 %v284_v6, %v277_v3  ;;  %v289_v14 = vadd.f32 %v285_v7, %v278_v4  ;;  %v354_v39 = vmul.f32 %v352_v54, %v994_v33 }
  0xdb   : > { %v342_v15 = vmul.f32 %v341_v53, %v334_v10  ;;  %v371_v16 = vpop.permute.xlu1 %370  ;;  %v369_v17 = vpop.permute.xlu0 %368  ;;  %v337_v23 = vmul.f32 %v336_v45, %v334_v10  ;;  %v347_v26 = vrot.slane %v343_v11, 1  ;;  %v362_v43 = vrot.slane %v1057_v1, 1 }
  0xdc   : > { %v374_v20 = vsel %vm372_vm8, %v371_v16, %v369_v17  ;;  %v308_v21 = vadd.f32 %v306_v12, %v288_v13  ;;  %v309_v22 = vadd.f32 %v307_v9, %v289_v14  ;;  %v373_v28 = vsel %vm372_vm8, %v369_v17, %v371_v16 }
  0xdd   : > { %v346_v32 = vrot.slane %v342_v15, 1  ;;  %v382_v36 = vsel %vm376_vm9, %v374_v20, 0.0  ;;  %v383_v44 = vstv %s1063_s23  ;;  %v389_v45 = vmul.f32 %v388_v27, %v373_v28 }
  0xde   : > { %v319_v29 = vadd.f32 %v315_v18, %v308_v21  ;;  %v320_v30 = vadd.f32 %v316_v19, %v309_v22  ;;  %v390_v46 = vmul.f32 %v388_v27, %v382_v36  ;;  %v419_v47 = vstv %s1069_s19 }
  0xdf   : > { %v402_v37 = vpop.permute.xlu1 %401  ;;  %v400_v38 = vpop.permute.xlu0 %399  ;;  %v384_v53 = vmul.f32 %v383_v44, %v373_v28  ;;  %v385_v56 = vmul.f32 %v383_v44, %v382_v36  ;;  %v414_v59 = vstv %s1078_s24  ;;  %v393_v1 = vrot.slane %v389_v45, 1 }
  0xe0   : > { %v405_v40 = vsel %vm403_vm10, %v402_v37, %v400_v38  ;;  %v339_v41 = vadd.f32 %v337_v23, %v319_v29  ;;  %v340_v42 = vadd.f32 %v338_v24, %v320_v30  ;;  %v404_v49 = vsel %vm403_vm10, %v400_v38, %v402_v37 }
  0xe1   : > { %v413_v50 = vsel %vm407_vm11, %v405_v40, 0.0  ;;  %v420_v60 = vmul.f32 %v419_v47, %v404_v49  ;;  %v394_v2 = vrot.slane %v390_v46, 1  ;;  %v450_v3 = vstv %s1087_s12 }
  0xe2   : > { %v350_v33 = vadd.f32 %v346_v32, %v339_v41  ;;  %v351_v48 = vadd.f32 %v347_v26, %v340_v42  ;;  %v421_v61 = vmul.f32 %v419_v47, %v413_v50  ;;  %v415_v7 = vmul.f32 %v414_v59, %v404_v49 }
  0xe3   : > { %v433_v51 = vpop.permute.xlu1 %432  ;;  %v431_v52 = vpop.permute.xlu0 %430  ;;  %v416_v8 = vmul.f32 %v414_v59, %v413_v50  ;;  %v424_v9 = vrot.slane %v420_v60, 1  ;;  %v445_v11 = vstv %s1092_s18  ;;  %v474_v37 = vshrl.u32 %v240_v34, 7 }
  0xe4   : > { %v355_v54 = vadd.f32 %v353_v25, %v350_v33  ;;  %v356_v55 = vadd.f32 %v354_v39, %v351_v48  ;;  %v436_v58 = vsel %vm434_vm12, %v433_v51, %v431_v52  ;;  %v435_v4 = vsel %vm434_vm12, %v431_v52, %v433_v51 }
  0xe5   : > { %v444_v5 = vsel %vm438_vm13, %v436_v58, 0.0  ;;  %v425_v10 = vrot.slane %v421_v61, 1  ;;  %v451_v14 = vmul.f32 %v450_v3, %v435_v4  ;;  %v446_v18 = vmul.f32 %v445_v11, %v435_v4 }
  0xe6   : > { %v366_v62 = vadd.f32 %v362_v43, %v355_v54  ;;  %v367_v63 = vadd.f32 %v363_v31, %v356_v55  ;;  %v452_v15 = vmul.f32 %v450_v3, %v444_v5  ;;  %v447_v19 = vmul.f32 %v445_v11, %v444_v5 }
  0xe7   : > { %v455_v35 = vrot.slane %v451_v14, 1  ;;  %v475_v38 = vsub.s32 0, %v474_v37 }
  0xe8   : > { %v386_v57 = vadd.f32 %v384_v53, %v366_v62  ;;  %v387_v6 = vadd.f32 %v385_v56, %v367_v63  ;;  %v456_v22 = vrot.slane %v452_v15, 1 }
  0xea   : > { %v397_v12 = vadd.f32 %v393_v1, %v386_v57  ;;  %v398_v13 = vadd.f32 %v394_v2, %v387_v6 }
  0xec   : > { %v417_v16 = vadd.f32 %v415_v7, %v397_v12  ;;  %v418_v17 = vadd.f32 %v416_v8, %v398_v13 }
  0xee   : > { %v428_v20 = vadd.f32 %v424_v9, %v417_v16  ;;  %v429_v21 = vadd.f32 %v425_v10, %v418_v17 }
  0xf0   : > { %v448_v23 = vadd.f32 %v446_v18, %v428_v20  ;;  %v449_v24 = vadd.f32 %v447_v19, %v429_v21 }
  0xf2   : > { %v459_v25 = vadd.f32 %v455_v35, %v448_v23  ;;  %v460_v26 = vadd.f32 %v456_v22, %v449_v24 }
  0xf4   : > { %v608_v27 = vmul.f32 -1.442695, %v459_v25  ;;  %v609_v28 = vmul.f32 -1.442695, %v460_v26 }
  0xf6   : > { %681 = vpow2.f32 %v608_v27 }
  0xf7   : > { %683 = vpow2.f32 %v609_v28 }
 0x100   : > { %v682_v29 = vpop.eup %681 }
 0x101   : > { %v684_v30 = vpop.eup %683  ;;  %v467_v32 = vadd.f32 1.0, %v682_v29 }
 0x102   : > { %v468_v36 = vadd.f32 1.0, %v684_v30 }
 0x103   : > { %685 = vrcp.f32 %v467_v32 }
 0x104   : > { %687 = vrcp.f32 %v468_v36 }
 0x10d   : > { %v686_v39 = vpop.eup %685 }
 0x10e   : > { %v688_v31 = vpop.eup %687  ;;  %v476_v40 = vrot.slane %v686_v39, %v475_v38 }
 0x10f   : > { %v480_v41 = vrot.slane %v688_v31, %v475_v38 }
 0x111   : > { %v483_v42 = vcombine.low %v476_v40, %v480_v41 }
 0x113   : > { %v485_v43 = vmul.f32 %v483_v42, %v984_v0 }
 0x115   : > { %486 = vst [vmem:[%s201_s22] sm:$0xff] %v485_v43 }
 0x116   : > { %747 = shalt.err (!%p744_p5)
}
 0x117   : > { %s748_s10 = scalar_lea.hbm %s1113_s29, 128  ;;  %s752_s13 = scalar_lea.hbm %s1160_s3, 256 }
 0x118   : > { %p749_p10 = scmp.ne.s32.totalorder %s1113_s29, %s748_s10  ;;  %p753_p4 = scmp.lt.u32.totalorder %s1113_s29, %s1160_s3 }
 0x119   : > { %p754_p6 = scmp.lt.u32.totalorder %s752_s13, %s748_s10  ;;  %p756_p9 = scmp.lt.u32.totalorder %s748_s10, %s1113_s29 }
 0x11a   : > { %p750_p2 = pnand %p749_p10, %p1175_p11 }
 0x11b   : > { %p755_p8 = por %p754_p6, %p753_p4 }
 0x11c   : > { %p751_p1 = pneg %p750_p2 }
 0x11d   : > { %p757_p13 = por %p756_p9, %p755_p8 }
 0x11f   : > { %p758_p7 = pnand %p757_p13, %p751_p1 }
 0x121   : > { %761 = shalt.err (!%p758_p7)
}
 0x122   : > { %623 = dma.vmem_to_hbm [thread:$0]  (%p1175_p11), %s1115_s26, 128, %s1113_s29, %s488_s30  }
 0x123 PF: > { %s514_s24 = sand.u32 1, %s792_s14   ;;  %p1176_p0 = scmp.ne.s32.totalorder %s1165_s20, 0 }
 0x124   : > { %p1177_p3 = scmp.ge.s32.totalorder %s804_s17, 2  ;;  %s515_s12 = scalar_lea.sflag [#allocation5], %s514_s24 }
 0x126   : > { %p634_p12 = pnand %p1177_p3, %p1176_p0 }
 0x128   : > { %787 = dma.done.wait (!%p634_p12), %s515_s12, 128  }
 0x129   : > { %789 = vsyncadd (!%p634_p12), %s515_s12, 4294967168  ;;  %p18_p5 = scmp.ge.s32.totalorder %s889_s25, 4   ;;  %s1178_s14 = smov %s796_s15 }
 0x12a   : > { %s1179_s15 = smov %s800_s16  ;;  %s1180_s16 = smov %s913_s5 }
 0x12b   : > { %s1181_s17 = smov %s889_s25  ;;  %20 = sbr.rel (!%p18_p5) target bundleno = 8 (0x8), region = 82 }
 0x132   :  { %520 = vsyncpa [#allocation4], 1 }
 0x133   :  { %522 = vsyncpa [#allocation4 + $0x1], 1 }
 0x134   :  { %523 = vsyncpa [#allocation5], 1 }
 0x135   :  { %525 = vsyncpa [#allocation5 + $0x1], 1 }
 0x136   :  { %526 = vsyncpa [#allocation6], 1 }
 0x137   :  { %528 = vsyncpa [#allocation6 + $0x1], 1 }

</bundles_post_ra>
